<compile_context>
chip_gen: v6e
topology: v6e:2x2x1
jax: 0.10.0
libtpu: 0.0.40
codegen_flags: <defaults>
</compile_context>

<pallas_src>
import functools

import jax
import jax.numpy as jnp
from jax.experimental import pallas as pl
from jax.experimental.pallas import tpu as pltpu


def _dgi_kernel(adj_ref, x_both_ref, w_enc_ref, b_enc_ref, w_big_ref,
                b_disc_ref, out_ref):
    n = adj_ref.shape[0]           # N
    hp = w_enc_ref.shape[1]        # padded hidden size HP (2*HP lanes in output)

    # (1) single feature-projection matmul for pos+neg (rows stacked): [2N, HP]
    xw_both = jnp.dot(x_both_ref[...], w_enc_ref[...],
                      preferred_element_type=jnp.float32)

    # (2) lane-concat pos | neg -> [N, 2HP]; ONE adjacency contraction for both
    #     branches (bf16 MXU operands, f32 accumulation), bias + ReLU in f32.
    xw_cat = jnp.concatenate([xw_both[:n, :], xw_both[n:, :]],
                             axis=1).astype(jnp.bfloat16)
    z_cat = jnp.maximum(
        jnp.dot(adj_ref[...], xw_cat, preferred_element_type=jnp.float32)
        + b_enc_ref[...], 0.0)                                   # [N, 2HP] f32

    # (3) readout: sigmoid(mean over nodes) on the positive half.
    summary = jax.nn.sigmoid(jnp.mean(z_cat[:, :hp], axis=0, keepdims=True))
    s_cat = jnp.concatenate([summary, summary], axis=1)          # [1, 2HP]

    # (4) ONE block-diagonal discriminator matmul -> lane-dense [N, 2HP] output
    #     (columns 0:HP = pos logits, HP:2HP = neg logits).
    z_scaled = (z_cat * s_cat).astype(jnp.bfloat16)
    out_ref[...] = (jnp.dot(z_scaled, w_big_ref[...],
                            preferred_element_type=jnp.float32)
                    + b_disc_ref[...])


@jax.jit
def dgi_forward(adj_norm, x, x_perm, w_enc, b_enc, w_disc, b_disc):
    """Returns (pos_logits, neg_logits), each [N, H]."""
    N, F_in = x.shape
    H = w_disc.shape[0]
    HP = ((H + 63) // 64) * 64           # pad hidden so 2*HP is a multiple of 128
    f32, bf16 = jnp.float32, jnp.bfloat16

    # --- wrapper-side layout plumbing (zero-padding is mathematically inert) ---
    x_both = jnp.concatenate([x, x_perm], axis=0).astype(bf16)       # [2N, F_in]
    adj_bf = adj_norm.astype(bf16)                                   # [N, N]
    w_enc_p = jnp.zeros((F_in, HP), f32).at[:, :H].set(w_enc).astype(bf16)
    b_enc_p = jnp.zeros((1, HP), f32).at[:, :H].set(b_enc.reshape(1, -1))
    b_enc_cat = jnp.concatenate([b_enc_p, b_enc_p], axis=1)          # [1, 2HP]
    w_disc_t_p = jnp.zeros((HP, HP), f32).at[:H, :H].set(w_disc.T)
    zeros_hp = jnp.zeros((HP, HP), f32)
    w_big = jnp.concatenate(                                         # [2HP, 2HP]
        [jnp.concatenate([w_disc_t_p, zeros_hp], axis=1),
         jnp.concatenate([zeros_hp, w_disc_t_p], axis=1)], axis=0).astype(bf16)
    b_disc_p = jnp.zeros((1, HP), f32).at[:, :H].set(b_disc.reshape(1, -1))
    b_disc_cat = jnp.concatenate([b_disc_p, b_disc_p], axis=1)       # [1, 2HP]

    vmem = pl.BlockSpec(memory_space=pltpu.MemorySpace.VMEM)
    out_cat = pl.pallas_call(
        _dgi_kernel,
        out_shape=jax.ShapeDtypeStruct((N, 2 * HP), f32),
        in_specs=[vmem] * 6,
        out_specs=vmem,
        compiler_params=pltpu.CompilerParams(vmem_limit_bytes=32 * 1024 * 1024),
    )(adj_bf, x_both, w_enc_p, b_enc_cat, w_big, b_disc_cat)

    return out_cat[:, :H], out_cat[:, HP:HP + H]


def build_norm_adj(edge_index, num_nodes):
    """Dense D^-1/2 (A + I) D^-1/2 from a [2, E] edge_index (plain-JAX glue)."""
    src, dst = edge_index[0], edge_index[1]
    adj = jnp.zeros((num_nodes, num_nodes), jnp.float32)
    adj = adj.at[src, dst].set(1.0)
    adj = adj.at[dst, src].set(1.0)                       # symmetric
    adj = adj + jnp.eye(num_nodes, dtype=jnp.float32)     # self loops
    deg = jnp.sum(adj, axis=1)
    d_inv_sqrt = 1.0 / jnp.sqrt(deg)
    return adj * d_inv_sqrt[:, None] * d_inv_sqrt[None, :]


def reference_forward_f32(adj_norm, x, x_perm, w_enc, b_enc, w_disc, b_disc):
    """Pure-f32 reference of the original module semantics (no quantization)."""
    enc = lambda f: jnp.maximum(adj_norm @ (f @ w_enc) + b_enc, 0.0)
    pos_z = enc(x)
    neg_z = enc(x_perm)
    summary = jax.nn.sigmoid(jnp.mean(pos_z, axis=0))
    pos_logits = (pos_z * summary) @ w_disc.T + b_disc
    neg_logits = (neg_z * summary) @ w_disc.T + b_disc
    return pos_logits, neg_logits


def reference_forward_matched(adj_norm, x, x_perm, w_enc, b_enc, w_disc, b_disc):
    """Reference that applies the same bf16 input roundings as the kernel,
    with full-precision f32 accumulation — tests the kernel, not the quantization."""
    f32, bf16 = jnp.float32, jnp.bfloat16
    rd = lambda a: a.astype(bf16).astype(f32)
    dot = functools.partial(jnp.dot, precision=jax.lax.Precision.HIGHEST)
    n = x.shape[0]
    xb = rd(jnp.concatenate([x, x_perm], axis=0))
    xw = dot(xb, rd(w_enc))
    xw_pos, xw_neg = rd(xw[:n]), rd(xw[n:])
    adj_ = rd(adj_norm)
    pos_z = jnp.maximum(dot(adj_, xw_pos) + b_enc, 0.0)
    neg_z = jnp.maximum(dot(adj_, xw_neg) + b_enc, 0.0)
    summary = jax.nn.sigmoid(jnp.mean(pos_z, axis=0, keepdims=True))
    wdt = rd(w_disc.T)
    pos_logits = dot(rd(pos_z * summary), wdt) + b_disc
    neg_logits = dot(rd(neg_z * summary), wdt) + b_disc
    return pos_logits, neg_logits


if __name__ == "__main__":
    N, F_IN, H = 64, 32, 32       # nodes, input features, hidden_channels

    key = jax.random.PRNGKey(0)
    k_x, k_we, k_be, k_wd, k_bd, k_perm = jax.random.split(key, 6)

    # deterministic inputs / parameters
    x = jax.random.normal(k_x, (N, F_IN), jnp.float32)
    w_enc = jax.random.normal(k_we, (F_IN, H), jnp.float32) * (1.0 / jnp.sqrt(F_IN))
    b_enc = jax.random.normal(k_be, (H,), jnp.float32) * 0.01
    w_disc = jax.random.normal(k_wd, (H, H), jnp.float32) * (1.0 / jnp.sqrt(H))
    b_disc = jax.random.normal(k_bd, (H,), jnp.float32) * 0.01

    # deterministic ring-graph edge_index [2, E]
    src = jnp.arange(N, dtype=jnp.int32)
    dst = (src + 1) % N
    edge_index = jnp.stack([src, dst], axis=0)
    adj_norm = build_norm_adj(edge_index, N)

    # negative-sample permutation (torch.randperm equivalent, host/JAX glue)
    perm = jax.random.permutation(k_perm, N)
    x_perm = x[perm]

    pos_logits, neg_logits = dgi_forward(
        adj_norm, x, x_perm, w_enc, b_enc, w_disc, b_disc)
    jax.block_until_ready((pos_logits, neg_logits))

    # strict check: same bf16 input roundings, f32 accumulation
    ref_pos_m, ref_neg_m = reference_forward_matched(
        adj_norm, x, x_perm, w_enc, b_enc, w_disc, b_disc)
    assert pos_logits.shape == (N, H) and neg_logits.shape == (N, H)
    assert jnp.allclose(pos_logits, ref_pos_m, atol=1e-3, rtol=1e-3)
    assert jnp.allclose(neg_logits, ref_neg_m, atol=1e-3, rtol=1e-3)

    # loose sanity check vs. pure-f32 original semantics (bf16 quantization error)
    ref_pos, ref_neg = reference_forward_f32(
        adj_norm, x, x_perm, w_enc, b_enc, w_disc, b_disc)
    assert float(jnp.max(jnp.abs(pos_logits - ref_pos))) < 0.5
    assert float(jnp.max(jnp.abs(neg_logits - ref_neg))) < 0.5

    print("KERNEL_OK")
</pallas_src>

<mosaic_0001>
module attributes {stable_mosaic.version = 11 : i64} {
  func.func @_dgi_kernel(%arg0: memref<64x64xbf16, #tpu.memory_space<vmem>>, %arg1: memref<128x32xbf16, #tpu.memory_space<vmem>>, %arg2: memref<32x64xbf16, #tpu.memory_space<vmem>>, %arg3: memref<1x128xf32, #tpu.memory_space<vmem>>, %arg4: memref<128x128xbf16, #tpu.memory_space<vmem>>, %arg5: memref<1x128xf32, #tpu.memory_space<vmem>>, %arg6: memref<64x128xf32, #tpu.memory_space<vmem>>) attributes {dimension_semantics = [], scalar_prefetch = 0 : i64, scratch_operands = 0 : i64, tpu.core_type = #tpu.core_type<tc>} {
    %c0 = arith.constant 0 : index
    %c0_0 = arith.constant 0 : index
    %0 = vector.load %arg1[%c0, %c0_0] : memref<128x32xbf16, #tpu.memory_space<vmem>>, vector<128x32xbf16>
    %c0_1 = arith.constant 0 : index
    %c0_2 = arith.constant 0 : index
    %1 = vector.load %arg2[%c0_1, %c0_2] : memref<32x64xbf16, #tpu.memory_space<vmem>>, vector<32x64xbf16>
    %cst = arith.constant dense<0.000000e+00> : vector<128x64xf32>
    %2 = tpu.matmul %0, %1, %cst {dimension_numbers = #tpu.dot_dimension_numbers<[1], [0], [0], [1], [0, 0, 1, 1], [], []>} : vector<128x32xbf16>, vector<32x64xbf16>, vector<128x64xf32> -> vector<128x64xf32>
    %3 = vector.extract_strided_slice %2 {offsets = [0, 0], sizes = [64, 64], strides = [1, 1]} : vector<128x64xf32> to vector<64x64xf32>
    %4 = vector.extract_strided_slice %2 {offsets = [64, 0], sizes = [64, 64], strides = [1, 1]} : vector<128x64xf32> to vector<64x64xf32>
    %5 = tpu.concatenate %3, %4 in 1 : vector<64x64xf32>, vector<64x64xf32> -> vector<64x128xf32>
    %6 = arith.truncf %5 : vector<64x128xf32> to vector<64x128xbf16>
    %c0_3 = arith.constant 0 : index
    %c0_4 = arith.constant 0 : index
    %7 = vector.load %arg0[%c0_3, %c0_4] : memref<64x64xbf16, #tpu.memory_space<vmem>>, vector<64x64xbf16>
    %cst_5 = arith.constant dense<0.000000e+00> : vector<64x128xf32>
    %8 = tpu.matmul %7, %6, %cst_5 {dimension_numbers = #tpu.dot_dimension_numbers<[1], [0], [0], [1], [0, 0, 1, 1], [], []>} : vector<64x64xbf16>, vector<64x128xbf16>, vector<64x128xf32> -> vector<64x128xf32>
    %c0_6 = arith.constant 0 : index
    %c0_7 = arith.constant 0 : index
    %9 = vector.load %arg3[%c0_6, %c0_7] : memref<1x128xf32, #tpu.memory_space<vmem>>, vector<1x128xf32>
    %10 = vector.broadcast %9 : vector<1x128xf32> to vector<64x128xf32>
    %11 = arith.addf %8, %10 : vector<64x128xf32>
    %cst_8 = arith.constant 0.000000e+00 : f32
    %12 = vector.broadcast %cst_8 : f32 to vector<64x128xf32>
    %13 = arith.maximumf %11, %12 : vector<64x128xf32>
    %14 = vector.extract_strided_slice %13 {offsets = [0, 0], sizes = [64, 64], strides = [1, 1]} : vector<64x128xf32> to vector<64x64xf32>
    %cst_9 = arith.constant dense<0.000000e+00> : vector<64xf32>
    %15 = vector.multi_reduction <add>, %14, %cst_9 [0] : vector<64x64xf32> to vector<64xf32>
    %16 = vector.shape_cast %15 : vector<64xf32> to vector<1x64xf32>
    %cst_10 = arith.constant 6.400000e+01 : f32
    %17 = vector.broadcast %cst_10 : f32 to vector<1x64xf32>
    %18 = arith.divf %16, %17 : vector<1x64xf32>
    %19 = arith.negf %18 : vector<1x64xf32>
    %20 = math.exp %19 : vector<1x64xf32>
    %cst_11 = arith.constant 1.000000e+00 : f32
    %21 = vector.broadcast %cst_11 : f32 to vector<1x64xf32>
    %22 = arith.addf %21, %20 : vector<1x64xf32>
    %23 = arith.divf %21, %22 : vector<1x64xf32>
    %24 = tpu.concatenate %23, %23 in 1 : vector<1x64xf32>, vector<1x64xf32> -> vector<1x128xf32>
    %25 = vector.broadcast %24 : vector<1x128xf32> to vector<64x128xf32>
    %26 = arith.mulf %13, %25 : vector<64x128xf32>
    %27 = arith.truncf %26 : vector<64x128xf32> to vector<64x128xbf16>
    %c0_12 = arith.constant 0 : index
    %c0_13 = arith.constant 0 : index
    %28 = vector.load %arg4[%c0_12, %c0_13] : memref<128x128xbf16, #tpu.memory_space<vmem>>, vector<128x128xbf16>
    %cst_14 = arith.constant dense<0.000000e+00> : vector<64x128xf32>
    %29 = tpu.matmul %27, %28, %cst_14 {dimension_numbers = #tpu.dot_dimension_numbers<[1], [0], [0], [1], [0, 0, 1, 1], [], []>} : vector<64x128xbf16>, vector<128x128xbf16>, vector<64x128xf32> -> vector<64x128xf32>
    %c0_15 = arith.constant 0 : index
    %c0_16 = arith.constant 0 : index
    %30 = vector.load %arg5[%c0_15, %c0_16] : memref<1x128xf32, #tpu.memory_space<vmem>>, vector<1x128xf32>
    %31 = vector.broadcast %30 : vector<1x128xf32> to vector<64x128xf32>
    %32 = arith.addf %29, %31 : vector<64x128xf32>
    %c0_17 = arith.constant 0 : index
    %c0_18 = arith.constant 0 : index
    %33 = vector.load %arg6[%c0_17, %c0_18] : memref<64x128xf32, #tpu.memory_space<vmem>>, vector<64x128xf32>
    tpu.vector_store %arg6[%c0_17, %c0_18], %32 {strides = array<i32>} : memref<64x128xf32, #tpu.memory_space<vmem>>, vector<64x128xf32>,
    return
  }
}

</mosaic_0001>

<bundles_post_ra>
// kernel: dgi_forward.1
= control target key start
LH: loop header
LB: loop body
LE: loop exit
PB: predicated region body
PF: predicated region fallthrough
CT: control target
= control target key end

     0   :  { %vm96_vm0 = vcmask 261120   ;;  %s755_s16 = smov 64   ;;  %vm250_vm1 = vcmask 523264   ;;  %s921_s2 = inlined_call_operand.vmem [shape: bf16[32,64], index: 2, kind: input, shape index: {}]   ;;  %s922_s1 = inlined_call_operand.vmem [shape: bf16[128,32], index: 1, kind: input, shape index: {}]   ;;  %s923_s0 = inlined_call_operand.vmem [shape: bf16[64,64], index: 0, kind: input, shape index: {}]   ;;  %s924_s4 = inlined_call_operand.vmem [shape: bf16[128,128], index: 4, kind: input, shape index: {}]   ;;  %s925_s3 = inlined_call_operand.vmem [shape: f32[1,128], index: 3, kind: input, shape index: {}]   ;;  %s926_s5 = inlined_call_operand.vmem [shape: f32[1,128], index: 5, kind: input, shape index: {}]   ;;  %s927_s6 = inlined_call_operand.vmem [shape: f32[64,128], index: 6, kind: output, shape index: {}]  }
   0x1   :  { %v729_v0 = vld [vmem:[%s921_s2 + $0x8] sm:$0xff]   ;;  %v730_v1 = vld [vmem:[%s921_s2] sm:$0xff]   ;;  %v733_v4 = vld [vmem:[%s922_s1 + $0x10] sm:$0xff]  }
   0x2   :  { %648 = vmatprep.subr.bf16.mxu0 %v729_v0  ;;  %v731_v2 = vld [vmem:[%s922_s1] sm:$0xff]   ;;  %v732_v3 = vld [vmem:[%s922_s1 + $0x8] sm:$0xff]   ;;  %v734_v5 = vld [vmem:[%s922_s1 + $0x18] sm:$0xff]  }
   0x3   :  { %649 = vmatpush3.bf16.msra.mxu0 %v729_v0  ;;  %652 = vmatprep.mubr.msk.bf16.mxu0 %vm96_vm0, %v731_v2  ;;  %v735_v6 = vld [vmem:[%s922_s1 + $0x20] sm:$0xff]   ;;  %v736_v7 = vld [vmem:[%s922_s1 + $0x28] sm:$0xff]   ;;  %v737_v8 = vld [vmem:[%s922_s1 + $0x30] sm:$0xff]  }
   0x4   :  { %650 = vmatprep.subr.bf16.mxu0 %v730_v1  ;;  %v738_v9 = vld [vmem:[%s922_s1 + $0x38] sm:$0xff]   ;;  %v739_v30 = vld [vmem:[%s923_s0] sm:$0xff]   ;;  %v740_v55 = vld [vmem:[%s923_s0 + $0x8] sm:$0xff]  }
   0x5   :  { %676 = vmatprep.mubr.msk.bf16.mxu1 %vm250_vm1, %v739_v30  ;;  %v741_v56 = vld [vmem:[%s923_s0 + $0x10] sm:$0xff]   ;;  %v742_v57 = vld [vmem:[%s923_s0 + $0x18] sm:$0xff]   ;;  %v745_v60 = vld [vmem:[%s924_s4 + $0x28] sm:$0xff]  }
   0x6   :  { %v743_v58 = vld [vmem:[%s924_s4 + $0x38] sm:$0xff]   ;;  %v744_v59 = vld [vmem:[%s924_s4 + $0x30] sm:$0xff]   ;;  %v746_v61 = vld [vmem:[%s924_s4 + $0x20] sm:$0xff]  }
   0x7   :  { %651 = vmatpush3.bf16.msra.mxu0 %v730_v1  ;;  %v747_v62 = vld [vmem:[%s924_s4 + $0x18] sm:$0xff]   ;;  %v748_v63 = vld [vmem:[%s924_s4 + $0x10] sm:$0xff]   ;;  %v749_v0 = vld [vmem:[%s924_s4 + $0x8] sm:$0xff]  }
   0x8   :  { %684 = vmatprep.subr.bf16.mxu0 %v743_v58  ;;  %v599_v2 = vld [vmem:[%s925_s3] ss:$0 sm:$0xff] }
   0xa   :  { %653 = vmatmul.mubr.msk.bf16.vlgmr.msra.gmra.mxu0 %vm96_vm0, %v732_v3 }
   0xb   :  { %656 = vmatprep.mubr.msk.bf16.mxu0 %vm96_vm0, %v733_v4  ;;  %685 = vmatpush3.bf16.msra.mxu0 %v743_v58 }
   0xc   :  { %686 = vmatprep.subr.bf16.mxu0 %v744_v59 }
   0xf   :  { %687 = vmatpush3.bf16.msra.mxu0 %v744_v59 }
  0x10   :  { %688 = vmatprep.subr.bf16.mxu0 %v745_v60 }
  0x12   :  { %657 = vmatmul.mubr.msk.bf16.gmra.mxu0 %vm96_vm0, %v734_v5 }
  0x13   :  { %660 = vmatprep.mubr.msk.bf16.mxu0 %vm96_vm0, %v735_v6  ;;  %689 = vmatpush3.bf16.msra.mxu0 %v745_v60 }
  0x14   :  { %690 = vmatprep.subr.bf16.mxu0 %v746_v61 }
  0x17   :  { %691 = vmatpush3.bf16.msra.mxu0 %v746_v61 }
  0x18   :  { %692 = vmatprep.subr.bf16.mxu0 %v747_v62 }
  0x1a   :  { %661 = vmatmul.mubr.msk.bf16.gmra.mxu0 %vm96_vm0, %v736_v7 }
  0x1b   :  { %664 = vmatprep.mubr.msk.bf16.mxu0 %vm96_vm0, %v737_v8  ;;  %693 = vmatpush3.bf16.msra.mxu0 %v747_v62 }
  0x1c   :  { %694 = vmatprep.subr.bf16.mxu0 %v748_v63 }
  0x1f   :  { %695 = vmatpush3.bf16.msra.mxu0 %v748_v63 }
  0x20   :  { %696 = vmatprep.subr.bf16.mxu0 %v749_v0 }
  0x22   :  { %665 = vmatmul.mubr.msk.bf16.gmra.mxu0 %vm96_vm0, %v738_v9 }
  0x23   :  { %697 = vmatpush3.bf16.msra.mxu0 %v749_v0 }
  0xca   :  { %v654_v10 = vpop.f32.mrf.mxu0 }
  0xcc   :  { %v155_v11 = vpop.f32.mrf.mxu0 }
  0xce   :  { %v655_v12 = vpop.f32.mrf.mxu0 }
  0xd0   :  { %v158_v13 = vpop.f32.mrf.mxu0 }
  0xd2   :  { %v658_v14 = vpop.f32.mrf.mxu0 }
  0xd4   :  { %v171_v15 = vpop.f32.mrf.mxu0 }
  0xd6   :  { %v659_v16 = vpop.f32.mrf.mxu0 }
  0xd8   :  { %v174_v17 = vpop.f32.mrf.mxu0 }
  0xda   :  { %v662_v18 = vpop.f32.mrf.mxu0 }
  0xdc   :  { %v187_v19 = vpop.f32.mrf.mxu0 }
  0xde   :  { %v663_v20 = vpop.f32.mrf.mxu0 }
  0xdf   :  { %v719_v21 = vpack.i.bf16 %v663_v20, %v662_v18 }
  0xe0   :  { %v190_v22 = vpop.f32.mrf.mxu0 }
  0xe1   :  { %720 = vrot.lane.b32.xlu1 %v719_v21, %s755_s16  ;;  %v724_v24 = vpack.i.bf16 %v190_v22, %v187_v19 }
  0xe2   :  { %v666_v23 = vpop.f32.mrf.mxu0 }
  0xe4   :  { %v203_v25 = vpop.f32.mrf.mxu0 }
  0xe5   :  { %725 = vrot.lane.b32.xlu1 %v724_v24, %s755_s16 }
  0xe6   :  { %v667_v26 = vpop.f32.mrf.mxu0 }
  0xe7   :  { %v709_v27 = vpack.i.bf16 %v667_v26, %v666_v23 }
  0xe8   :  { %v206_v28 = vpop.f32.mrf.mxu0 }
  0xe9   :  { %710 = vrot.lane.b32.xlu0 %v709_v27, %s755_s16  ;;  %v714_v29 = vpack.i.bf16 %v206_v28, %v203_v25 }
  0xed   :  { %715 = vrot.lane.b32.xlu0 %v714_v29, %s755_s16 }
 0x153   :  { %v721_v31 = vpop.permute.xlu1 %720 }
 0x154   :  { %v723_v35 = vunpack.i.h.bf16 %v721_v31  ;;  %v722_v36 = vunpack.i.l.bf16 %v721_v31 }
 0x156   :  { %v253_v44 = vsel %vm250_vm1, %v654_v10, %v722_v36  ;;  %v254_v45 = vsel %vm250_vm1, %v655_v12, %v723_v35 }
 0x157   :  { %v726_v39 = vpop.permute.xlu1 %725  ;;  %v260_v51 = vpack.c.bf16 %v254_v45, %v253_v44 }
 0x158   :  { %v728_v46 = vunpack.i.h.bf16 %v726_v39  ;;  %v727_v47 = vunpack.i.l.bf16 %v726_v39 }
 0x15a   :  { %v251_v52 = vsel %vm250_vm1, %v155_v11, %v727_v47  ;;  %v252_v53 = vsel %vm250_vm1, %v158_v13, %v728_v46 }
 0x15b   :  { %v711_v32 = vpop.permute.xlu0 %710  ;;  %v259_v54 = vpack.c.bf16 %v252_v53, %v251_v52  ;;  %v417_v53 = vlaneseq }
 0x15c   :  { %v713_v33 = vunpack.i.h.bf16 %v711_v32  ;;  %v712_v34 = vunpack.i.l.bf16 %v711_v32 }
 0x15e   :  { %v257_v37 = vsel %vm250_vm1, %v658_v14, %v712_v34  ;;  %v258_v38 = vsel %vm250_vm1, %v659_v16, %v713_v33 }
 0x15f   :  { %v716_v40 = vpop.permute.xlu0 %715  ;;  %v262_v41 = vpack.c.bf16 %v258_v38, %v257_v37 }
 0x160   :  { %v718_v42 = vunpack.i.h.bf16 %v716_v40  ;;  %v717_v43 = vunpack.i.l.bf16 %v716_v40 }
 0x161   :  { %668 = vmatprep.subr.bf16.mxu1 %v262_v41 }
 0x162   :  { %669 = vmatpush3.bf16.msra.mxu1 %v262_v41  ;;  %v255_v48 = vsel %vm250_vm1, %v171_v15, %v717_v43  ;;  %v256_v49 = vsel %vm250_vm1, %v174_v17, %v718_v42 }
 0x163   :  { %v261_v50 = vpack.c.bf16 %v256_v49, %v255_v48 }
 0x165   :  { %670 = vmatprep.subr.bf16.mxu1 %v261_v50 }
 0x166   :  { %671 = vmatpush3.bf16.msra.mxu1 %v261_v50 }
 0x167   :  { %672 = vmatprep.subr.bf16.mxu1 %v260_v51 }
 0x16a   :  { %673 = vmatpush3.bf16.msra.mxu1 %v260_v51  ;;  %v750_v51 = vld [vmem:[%s924_s4] sm:$0xff]  }
 0x16b   :  { %674 = vmatprep.subr.bf16.mxu1 %v259_v54  ;;  %698 = vmatprep.subr.bf16.mxu0 %v750_v51 }
 0x16c   :  { %699 = vmatpush3.bf16.msra.mxu0 %v750_v51 }
 0x16e   :  { %675 = vmatpush3.bf16.msra.mxu1 %v259_v54  ;;  %v418_v54 = vshrl.u32 %v417_v53, 7 }
 0x171   :  { %677 = vmatmul.mubr.msk.bf16.vlgmr.msra.gmra.mxu1 %vm250_vm1, %v740_v55  ;;  %v419_v55 = vsub.s32 0, %v418_v54 }
 0x172   :  { %680 = vmatprep.mubr.msk.bf16.mxu1 %vm250_vm1, %v741_v56 }
 0x179   :  { %681 = vmatmul.mubr.msk.bf16.gmra.mxu1 %vm250_vm1, %v742_v57 }
 0x231   :  { %v678_v1 = vpop.f32.mrf.mxu1 }
 0x232   :  { %v353_v6 = vadd.f32 %v678_v1, %v599_v2 }
 0x233   :  { %v344_v3 = vpop.f32.mrf.mxu1 }
 0x234   :  { %v345_v4 = vadd.f32 %v599_v2, %v344_v3  ;;  %v377_v12 = vmax.f32 %v353_v6, 0.0 }
 0x235   :  { %v679_v5 = vpop.f32.mrf.mxu1 }
 0x236   :  { %v375_v8 = vmax.f32 %v345_v4, 0.0  ;;  %v356_v9 = vadd.f32 %v679_v5, %v599_v2  ;;  %v386_v21 = vsel %vm250_vm1, %v377_v12, 0.0 }
 0x237   :  { %v347_v7 = vpop.f32.mrf.mxu1 }
 0x238   :  { %v348_v10 = vadd.f32 %v599_v2, %v347_v7  ;;  %v383_v15 = vsel %vm250_vm1, %v375_v8, 0.0  ;;  %v378_v16 = vmax.f32 %v356_v9, 0.0  ;;  %v609_v7 = vld [vmem:[%s926_s5] ss:$0 sm:$0xff] }
 0x239   :  { %v682_v11 = vpop.f32.mrf.mxu1 }
 0x23a   :  { %v376_v13 = vmax.f32 %v348_v10, 0.0  ;;  %v369_v22 = vadd.f32 %v682_v11, %v599_v2  ;;  %v388_v26 = vsel %vm250_vm1, %v378_v16, 0.0 }
 0x23b   :  { %v360_v14 = vpop.f32.mrf.mxu1 }
 0x23c   :  { %v384_v17 = vsel %vm250_vm1, %v376_v13, 0.0  ;;  %v361_v18 = vadd.f32 %v599_v2, %v360_v14  ;;  %v381_v30 = vmax.f32 %v369_v22, 0.0 }
 0x23d   :  { %v385_v19 = vadd.f32 %v384_v17, %v383_v15  ;;  %v683_v20 = vpop.f32.mrf.mxu1 }
 0x23e   :  { %v379_v23 = vmax.f32 %v361_v18, 0.0  ;;  %v372_v27 = vadd.f32 %v683_v20, %v599_v2  ;;  %v394_v37 = vsel %vm250_vm1, %v381_v30, 0.0 }
 0x23f   :  { %v387_v24 = vadd.f32 %v386_v21, %v385_v19  ;;  %v363_v25 = vpop.f32.mrf.mxu1 }
 0x240   :  { %v364_v28 = vadd.f32 %v599_v2, %v363_v25  ;;  %v390_v31 = vsel %vm250_vm1, %v379_v23, 0.0  ;;  %v382_v34 = vmax.f32 %v372_v27, 0.0 }
 0x241   :  { %v389_v29 = vadd.f32 %v388_v26, %v387_v24 }
 0x242   :  { %v380_v32 = vmax.f32 %v364_v28, 0.0  ;;  %v396_v39 = vsel %vm250_vm1, %v382_v34, 0.0 }
 0x243   :  { %v391_v33 = vadd.f32 %v390_v31, %v389_v29 }
 0x244   :  { %v392_v35 = vsel %vm250_vm1, %v380_v32, 0.0 }
 0x245   :  { %v393_v36 = vadd.f32 %v392_v35, %v391_v33 }
 0x247   :  { %v395_v38 = vadd.f32 %v394_v37, %v393_v36 }
 0x249   :  { %v397_v40 = vadd.f32 %v396_v39, %v395_v38 }
 0x24b   :  { %v398_v41 = vrot.slane %v397_v40, 4 }
 0x24d   :  { %v399_v42 = vadd.f32 %v398_v41, %v397_v40 }
 0x24f   :  { %v400_v43 = vrot.slane %v399_v42, 2 }
 0x251   :  { %v401_v44 = vadd.f32 %v400_v43, %v399_v42 }
 0x253   :  { %v402_v45 = vrot.slane %v401_v44, 1 }
 0x255   :  { %v403_v46 = vadd.f32 %v402_v45, %v401_v44 }
 0x257   :  { %v608_v47 = vmul.f32 -0.015625, %v403_v46 }
 0x259   :  { %v407_v48 = vmul.f32 1.442695, %v608_v47 }
 0x25b   :  { %751 = vpow2.f32 %v407_v48 }
 0x268   :  { %v752_v49 = vpop.eup %751 }
 0x269   :  { %v409_v50 = vadd.f32 1.0, %v752_v49 }
 0x26b   :  { %753 = vrcp.f32 %v409_v50 }
 0x278   :  { %v754_v52 = vpop.eup %753 }
 0x279   :  { %413 = vrot.lane.b32.xlu0 %v754_v52, %s755_s16 }
 0x2eb   :  { %v414_v56 = vpop.permute.xlu0 %413 }
 0x2ec   :  { %v416_v57 = vsel %vm250_vm1, %v754_v52, %v414_v56 }
 0x2ed   :  { %v420_v58 = vrot.slane %v416_v57, %v419_v55 }
 0x2ef   :  { %v421_v59 = vmul.f32 %v420_v58, %v375_v8  ;;  %v422_v60 = vmul.f32 %v420_v58, %v376_v13  ;;  %v423_v61 = vmul.f32 %v420_v58, %v377_v12  ;;  %v424_v62 = vmul.f32 %v420_v58, %v378_v16 }
 0x2f0   :  { %v425_v63 = vmul.f32 %v420_v58, %v379_v23  ;;  %v426_v0 = vmul.f32 %v420_v58, %v380_v32  ;;  %v427_v4 = vmul.f32 %v420_v58, %v381_v30  ;;  %v428_v5 = vmul.f32 %v420_v58, %v382_v34 }
 0x2f1   :  { %v429_v1 = vpack.c.bf16 %v422_v60, %v421_v59  ;;  %v430_v2 = vpack.c.bf16 %v424_v62, %v423_v61 }
 0x2f2   :  { %v431_v3 = vpack.c.bf16 %v426_v0, %v425_v63  ;;  %v432_v6 = vpack.c.bf16 %v428_v5, %v427_v4 }
 0x2f3   :  { %700 = vmatprep.mubr.bf16.mxu0 %v429_v1 }
 0x2f4   :  { %701 = vmatmul.mubr.bf16.vlgmr.msra.gmra.mxu0 %v430_v2 }
 0x2f5   :  { %704 = vmatprep.mubr.bf16.mxu0 %v431_v3 }
 0x2fc   :  { %705 = vmatmul.mubr.bf16.gmra.mxu0 %v432_v6 }
 0x3b4   :  { %v702_v8 = vpop.f32.mrf.mxu0 }
 0x3b5   :  { %v547_v9 = vadd.f32 %v702_v8, %v609_v7 }
 0x3b6   :  { %v538_v10 = vpop.f32.mrf.mxu0 }
 0x3b7   :  { %571 = vst [vmem:[%s927_s6 + $0x10] sm:$0xff] %v547_v9  ;;  %v539_v11 = vadd.f32 %v609_v7, %v538_v10 }
 0x3b8   :  { %v703_v12 = vpop.f32.mrf.mxu0 }
 0x3b9   :  { %569 = vst [vmem:[%s927_s6] sm:$0xff] %v539_v11  ;;  %v550_v13 = vadd.f32 %v703_v12, %v609_v7 }
 0x3ba   :  { %v541_v14 = vpop.f32.mrf.mxu0 }
 0x3bb   :  { %572 = vst [vmem:[%s927_s6 + $0x18] sm:$0xff] %v550_v13  ;;  %v542_v15 = vadd.f32 %v609_v7, %v541_v14 }
 0x3bc   :  { %v706_v16 = vpop.f32.mrf.mxu0 }
 0x3bd   :  { %570 = vst [vmem:[%s927_s6 + $0x8] sm:$0xff] %v542_v15  ;;  %v563_v17 = vadd.f32 %v706_v16, %v609_v7 }
 0x3be   :  { %v554_v18 = vpop.f32.mrf.mxu0 }
 0x3bf   :  { %575 = vst [vmem:[%s927_s6 + $0x30] sm:$0xff] %v563_v17  ;;  %v555_v19 = vadd.f32 %v609_v7, %v554_v18 }
 0x3c0   :  { %v707_v20 = vpop.f32.mrf.mxu0 }
 0x3c1   :  { %573 = vst [vmem:[%s927_s6 + $0x20] sm:$0xff] %v555_v19  ;;  %v566_v21 = vadd.f32 %v707_v20, %v609_v7 }
 0x3c2   :  { %v557_v22 = vpop.f32.mrf.mxu0 }
 0x3c3   :  { %576 = vst [vmem:[%s927_s6 + $0x38] sm:$0xff] %v566_v21  ;;  %v558_v23 = vadd.f32 %v609_v7, %v557_v22 }
 0x3c5   :  { %574 = vst [vmem:[%s927_s6 + $0x28] sm:$0xff] %v558_v23 }

</bundles_post_ra>
